<compile_context>
chip_gen: v6e
topology: v6e:2x2x1
jax: 0.10.0
libtpu: 0.0.40
codegen_flags: <defaults>
</compile_context>

<pallas_src>
import functools

import jax
import jax.numpy as jnp
from jax.experimental import pallas as pl
from jax.experimental.pallas import tpu as pltpu

STATE_SPACE_SIZE = 2
HIDDEN = 8
OUT = 1

LANE = 128                      # TPU lane width
SUBLANE = 8                     # f32 sublane count
MAX_C = 512                     # lanes per row of the dense 2-D batch layout
DEFAULT_BLOCK_ELEMS = 1 << 20   # batch elements per grid step (~4 MiB / plane)


def _cdiv(a, b):
    return -(-a // b)


def _round_up(n, m):
    return _cdiv(n, m) * m


def _lyapunov_kernel(w_ref, x0_ref, x1_ref, o_ref):
    """Dense (tile_rows, C) block: every element is one batch sample.

    w_ref (SMEM, f32[33]) = [w1[:,0] | w1[:,1] | b1 | w2 | b2]
    out = b2 + sum_j w2[j] * relu(w1[j,0]*x0 + w1[j,1]*x1 + b1[j])
    """
    x0 = x0_ref[...]
    x1 = x1_ref[...]
    acc = None
    for j in range(HIDDEN):  # static unroll over the 8 hidden units (pure VPU)
        pre = w_ref[j] * x0 + w_ref[HIDDEN + j] * x1 + w_ref[2 * HIDDEN + j]
        term = w_ref[3 * HIDDEN + j] * jnp.maximum(pre, 0.0)
        acc = term if acc is None else acc + term
    o_ref[...] = acc + w_ref[4 * HIDDEN]


def pack_params(w1, b1, w2, b2):
    """Pack PyTorch-convention params once into a flat f32[33] SMEM vector.

    w1: (8, 2), b1: (8,), w2: (1, 8), b2: (1,)
    """
    f32 = jnp.float32
    w1 = jnp.asarray(w1, f32).reshape(HIDDEN, STATE_SPACE_SIZE)
    return jnp.concatenate([
        w1[:, 0],
        w1[:, 1],
        jnp.asarray(b1, f32).reshape(HIDDEN),
        jnp.asarray(w2, f32).reshape(HIDDEN),
        jnp.asarray(b2, f32).reshape(OUT),
    ])


def _layout(batch, max_block_elems):
    """Static layout math: lanes/row, grid length, tile rows, padded rows."""
    max_block_elems = max(max_block_elems, SUBLANE * LANE)
    # Lanes per row: multiple of 128, small enough that an 8-row block fits
    # the per-step budget, no wider than the batch needs.
    c = min(
        MAX_C,
        max(LANE, (max_block_elems // SUBLANE) // LANE * LANE),
        _round_up(_cdiv(batch, SUBLANE), LANE),
    )
    rows = _cdiv(batch, c)
    max_tile_rows = max(SUBLANE, (max_block_elems // c) // SUBLANE * SUBLANE)
    grid_n = _cdiv(rows, max_tile_rows)
    # v7x megacore: give the "parallel" axis >= 2 steps when there is enough
    # work for two >= 8-row blocks.  Harmless on v5e/v6e (single TC).
    if grid_n == 1 and rows >= 2 * SUBLANE:
        grid_n = 2
    tile_rows = _round_up(_cdiv(rows, grid_n), SUBLANE)
    rows_padded = grid_n * tile_rows
    return c, grid_n, tile_rows, rows_padded


def _forward_planar(x0_2d, x1_2d, w_flat, grid_n, tile_rows):
    """Core kernel launch on SoA planes.  x0_2d/x1_2d: (rows_padded, C) f32."""
    rows_padded, c = x0_2d.shape
    blk = lambda i: (i, 0)
    return pl.pallas_call(
        _lyapunov_kernel,
        out_shape=jax.ShapeDtypeStruct((rows_padded, c), jnp.float32),
        grid=(grid_n,),
        in_specs=[
            pl.BlockSpec(memory_space=pltpu.MemorySpace.SMEM),   # weights (33,)
            pl.BlockSpec((tile_rows, c), blk),                   # x0 plane
            pl.BlockSpec((tile_rows, c), blk),                   # x1 plane
        ],
        out_specs=pl.BlockSpec((tile_rows, c), blk),
        compiler_params=pltpu.CompilerParams(
            dimension_semantics=("parallel",),
            vmem_limit_bytes=32 * 1024 * 1024,
        ),
    )(w_flat, x0_2d, x1_2d)


@functools.partial(jax.jit, static_argnames=("max_block_elems",))
def lyapunov_net_forward(x, w_flat, max_block_elems=DEFAULT_BLOCK_ELEMS):
    """x: (B, 2) float32 -> (B, 1) float32 (matches the PyTorch module)."""
    batch = x.shape[0]
    c, grid_n, tile_rows, rows_padded = _layout(batch, max_block_elems)
    bp = rows_padded * c

    xf = jnp.asarray(x, jnp.float32)
    pad = bp - batch
    # AoS -> SoA split + pad + reshape fuse under jit; padded lanes compute
    # garbage in-kernel and are sliced away below (never consumed).
    x0 = jnp.pad(xf[:, 0], (0, pad)).reshape(rows_padded, c)
    x1 = jnp.pad(xf[:, 1], (0, pad)).reshape(rows_padded, c)

    out_2d = _forward_planar(x0, x1, w_flat, grid_n, tile_rows)
    return out_2d.reshape(-1)[:batch].reshape(batch, OUT)


def init_params(key):
    """Deterministic init mimicking nn.Linear default (uniform +/- 1/sqrt(fan_in))."""
    k1, k2, k3, k4 = jax.random.split(key, 4)
    bound1 = 1.0 / jnp.sqrt(STATE_SPACE_SIZE)
    bound2 = 1.0 / jnp.sqrt(HIDDEN)
    w1 = jax.random.uniform(k1, (HIDDEN, STATE_SPACE_SIZE), jnp.float32,
                            -bound1, bound1)
    b1 = jax.random.uniform(k2, (HIDDEN,), jnp.float32, -bound1, bound1)
    w2 = jax.random.uniform(k3, (OUT, HIDDEN), jnp.float32, -bound2, bound2)
    b2 = jax.random.uniform(k4, (OUT,), jnp.float32, -bound2, bound2)
    return w1, b1, w2, b2


def reference_forward(x, w1, b1, w2, b2):
    """Plain-JAX reference matching the PyTorch module."""
    h = jnp.maximum(x @ w1.T + b1, 0.0)
    return h @ w2.T + b2


if __name__ == "__main__":
    key = jax.random.PRNGKey(0)
    kx, kp, kx2 = jax.random.split(key, 3)

    w1, b1, w2, b2 = init_params(kp)
    packed = pack_params(w1, b1, w2, b2)

    # Small-shape check (batch=2 -> single (8,128) dense block).
    batch = 2
    x = jax.random.normal(kx, (batch, STATE_SPACE_SIZE), jnp.float32)
    out = jax.block_until_ready(lyapunov_net_forward(x, packed))
    ref = reference_forward(x, w1, b1, w2, b2)
    assert out.shape == (batch, OUT), out.shape
    assert jnp.allclose(out, ref, atol=1e-5, rtol=1e-5), (out, ref)

    # Multi-grid-step check (2 grid steps, exercises tiling + padding path).
    batch2 = 3000
    x2 = jax.random.normal(kx2, (batch2, STATE_SPACE_SIZE), jnp.float32)
    out2 = jax.block_until_ready(
        lyapunov_net_forward(x2, packed, max_block_elems=2048))
    ref2 = reference_forward(x2, w1, b1, w2, b2)
    assert out2.shape == (batch2, OUT), out2.shape
    assert jnp.allclose(out2, ref2, atol=1e-5, rtol=1e-5)

    print("KERNEL_OK")
</pallas_src>

<mosaic_0001>
module attributes {stable_mosaic.version = 11 : i64} {
  func.func @_lyapunov_kernel(%arg0: i32, %arg1: memref<33xf32, #tpu.memory_space<smem>>, %arg2: memref<8x128xf32, #tpu.memory_space<vmem>>, %arg3: memref<8x128xf32, #tpu.memory_space<vmem>>, %arg4: memref<8x128xf32, #tpu.memory_space<vmem>>) attributes {dimension_semantics = [#tpu.dimension_semantics<parallel>], iteration_bounds = array<i64: 1>, scalar_prefetch = 0 : i64, scratch_operands = 0 : i64, tpu.core_type = #tpu.core_type<tc>, window_params = [{transform_indices = @transform_0, window_bounds = array<i64: 33>}, {transform_indices = @transform_1, window_bounds = array<i64: 8, 128>}, {transform_indices = @transform_2, window_bounds = array<i64: 8, 128>}, {transform_indices = @transform_3, window_bounds = array<i64: 8, 128>}]} {
    %c0 = arith.constant 0 : index
    %c0_0 = arith.constant 0 : index
    %0 = vector.load %arg2[%c0, %c0_0] : memref<8x128xf32, #tpu.memory_space<vmem>>, vector<8x128xf32>
    %c0_1 = arith.constant 0 : index
    %c0_2 = arith.constant 0 : index
    %1 = vector.load %arg3[%c0_1, %c0_2] : memref<8x128xf32, #tpu.memory_space<vmem>>, vector<8x128xf32>
    %c0_3 = arith.constant 0 : index
    %2 = memref.load %arg1[%c0_3] : memref<33xf32, #tpu.memory_space<smem>>
    %3 = vector.broadcast %2 : f32 to vector<8x128xf32>
    %4 = arith.mulf %3, %0 : vector<8x128xf32>
    %c8 = arith.constant 8 : index
    %5 = memref.load %arg1[%c8] : memref<33xf32, #tpu.memory_space<smem>>
    %6 = vector.broadcast %5 : f32 to vector<8x128xf32>
    %7 = arith.mulf %6, %1 : vector<8x128xf32>
    %8 = arith.addf %4, %7 : vector<8x128xf32>
    %c16 = arith.constant 16 : index
    %9 = memref.load %arg1[%c16] : memref<33xf32, #tpu.memory_space<smem>>
    %10 = vector.broadcast %9 : f32 to vector<8x128xf32>
    %11 = arith.addf %8, %10 : vector<8x128xf32>
    %c24 = arith.constant 24 : index
    %12 = memref.load %arg1[%c24] : memref<33xf32, #tpu.memory_space<smem>>
    %cst = arith.constant 0.000000e+00 : f32
    %13 = vector.broadcast %cst : f32 to vector<8x128xf32>
    %14 = arith.maximumf %11, %13 : vector<8x128xf32>
    %15 = vector.broadcast %12 : f32 to vector<8x128xf32>
    %16 = arith.mulf %15, %14 : vector<8x128xf32>
    %c1 = arith.constant 1 : index
    %17 = memref.load %arg1[%c1] : memref<33xf32, #tpu.memory_space<smem>>
    %18 = vector.broadcast %17 : f32 to vector<8x128xf32>
    %19 = arith.mulf %18, %0 : vector<8x128xf32>
    %c9 = arith.constant 9 : index
    %20 = memref.load %arg1[%c9] : memref<33xf32, #tpu.memory_space<smem>>
    %21 = vector.broadcast %20 : f32 to vector<8x128xf32>
    %22 = arith.mulf %21, %1 : vector<8x128xf32>
    %23 = arith.addf %19, %22 : vector<8x128xf32>
    %c17 = arith.constant 17 : index
    %24 = memref.load %arg1[%c17] : memref<33xf32, #tpu.memory_space<smem>>
    %25 = vector.broadcast %24 : f32 to vector<8x128xf32>
    %26 = arith.addf %23, %25 : vector<8x128xf32>
    %c25 = arith.constant 25 : index
    %27 = memref.load %arg1[%c25] : memref<33xf32, #tpu.memory_space<smem>>
    %cst_4 = arith.constant 0.000000e+00 : f32
    %28 = vector.broadcast %cst_4 : f32 to vector<8x128xf32>
    %29 = arith.maximumf %26, %28 : vector<8x128xf32>
    %30 = vector.broadcast %27 : f32 to vector<8x128xf32>
    %31 = arith.mulf %30, %29 : vector<8x128xf32>
    %32 = arith.addf %16, %31 : vector<8x128xf32>
    %c2 = arith.constant 2 : index
    %33 = memref.load %arg1[%c2] : memref<33xf32, #tpu.memory_space<smem>>
    %34 = vector.broadcast %33 : f32 to vector<8x128xf32>
    %35 = arith.mulf %34, %0 : vector<8x128xf32>
    %c10 = arith.constant 10 : index
    %36 = memref.load %arg1[%c10] : memref<33xf32, #tpu.memory_space<smem>>
    %37 = vector.broadcast %36 : f32 to vector<8x128xf32>
    %38 = arith.mulf %37, %1 : vector<8x128xf32>
    %39 = arith.addf %35, %38 : vector<8x128xf32>
    %c18 = arith.constant 18 : index
    %40 = memref.load %arg1[%c18] : memref<33xf32, #tpu.memory_space<smem>>
    %41 = vector.broadcast %40 : f32 to vector<8x128xf32>
    %42 = arith.addf %39, %41 : vector<8x128xf32>
    %c26 = arith.constant 26 : index
    %43 = memref.load %arg1[%c26] : memref<33xf32, #tpu.memory_space<smem>>
    %cst_5 = arith.constant 0.000000e+00 : f32
    %44 = vector.broadcast %cst_5 : f32 to vector<8x128xf32>
    %45 = arith.maximumf %42, %44 : vector<8x128xf32>
    %46 = vector.broadcast %43 : f32 to vector<8x128xf32>
    %47 = arith.mulf %46, %45 : vector<8x128xf32>
    %48 = arith.addf %32, %47 : vector<8x128xf32>
    %c3 = arith.constant 3 : index
    %49 = memref.load %arg1[%c3] : memref<33xf32, #tpu.memory_space<smem>>
    %50 = vector.broadcast %49 : f32 to vector<8x128xf32>
    %51 = arith.mulf %50, %0 : vector<8x128xf32>
    %c11 = arith.constant 11 : index
    %52 = memref.load %arg1[%c11] : memref<33xf32, #tpu.memory_space<smem>>
    %53 = vector.broadcast %52 : f32 to vector<8x128xf32>
    %54 = arith.mulf %53, %1 : vector<8x128xf32>
    %55 = arith.addf %51, %54 : vector<8x128xf32>
    %c19 = arith.constant 19 : index
    %56 = memref.load %arg1[%c19] : memref<33xf32, #tpu.memory_space<smem>>
    %57 = vector.broadcast %56 : f32 to vector<8x128xf32>
    %58 = arith.addf %55, %57 : vector<8x128xf32>
    %c27 = arith.constant 27 : index
    %59 = memref.load %arg1[%c27] : memref<33xf32, #tpu.memory_space<smem>>
    %cst_6 = arith.constant 0.000000e+00 : f32
    %60 = vector.broadcast %cst_6 : f32 to vector<8x128xf32>
    %61 = arith.maximumf %58, %60 : vector<8x128xf32>
    %62 = vector.broadcast %59 : f32 to vector<8x128xf32>
    %63 = arith.mulf %62, %61 : vector<8x128xf32>
    %64 = arith.addf %48, %63 : vector<8x128xf32>
    %c4 = arith.constant 4 : index
    %65 = memref.load %arg1[%c4] : memref<33xf32, #tpu.memory_space<smem>>
    %66 = vector.broadcast %65 : f32 to vector<8x128xf32>
    %67 = arith.mulf %66, %0 : vector<8x128xf32>
    %c12 = arith.constant 12 : index
    %68 = memref.load %arg1[%c12] : memref<33xf32, #tpu.memory_space<smem>>
    %69 = vector.broadcast %68 : f32 to vector<8x128xf32>
    %70 = arith.mulf %69, %1 : vector<8x128xf32>
    %71 = arith.addf %67, %70 : vector<8x128xf32>
    %c20 = arith.constant 20 : index
    %72 = memref.load %arg1[%c20] : memref<33xf32, #tpu.memory_space<smem>>
    %73 = vector.broadcast %72 : f32 to vector<8x128xf32>
    %74 = arith.addf %71, %73 : vector<8x128xf32>
    %c28 = arith.constant 28 : index
    %75 = memref.load %arg1[%c28] : memref<33xf32, #tpu.memory_space<smem>>
    %cst_7 = arith.constant 0.000000e+00 : f32
    %76 = vector.broadcast %cst_7 : f32 to vector<8x128xf32>
    %77 = arith.maximumf %74, %76 : vector<8x128xf32>
    %78 = vector.broadcast %75 : f32 to vector<8x128xf32>
    %79 = arith.mulf %78, %77 : vector<8x128xf32>
    %80 = arith.addf %64, %79 : vector<8x128xf32>
    %c5 = arith.constant 5 : index
    %81 = memref.load %arg1[%c5] : memref<33xf32, #tpu.memory_space<smem>>
    %82 = vector.broadcast %81 : f32 to vector<8x128xf32>
    %83 = arith.mulf %82, %0 : vector<8x128xf32>
    %c13 = arith.constant 13 : index
    %84 = memref.load %arg1[%c13] : memref<33xf32, #tpu.memory_space<smem>>
    %85 = vector.broadcast %84 : f32 to vector<8x128xf32>
    %86 = arith.mulf %85, %1 : vector<8x128xf32>
    %87 = arith.addf %83, %86 : vector<8x128xf32>
    %c21 = arith.constant 21 : index
    %88 = memref.load %arg1[%c21] : memref<33xf32, #tpu.memory_space<smem>>
    %89 = vector.broadcast %88 : f32 to vector<8x128xf32>
    %90 = arith.addf %87, %89 : vector<8x128xf32>
    %c29 = arith.constant 29 : index
    %91 = memref.load %arg1[%c29] : memref<33xf32, #tpu.memory_space<smem>>
    %cst_8 = arith.constant 0.000000e+00 : f32
    %92 = vector.broadcast %cst_8 : f32 to vector<8x128xf32>
    %93 = arith.maximumf %90, %92 : vector<8x128xf32>
    %94 = vector.broadcast %91 : f32 to vector<8x128xf32>
    %95 = arith.mulf %94, %93 : vector<8x128xf32>
    %96 = arith.addf %80, %95 : vector<8x128xf32>
    %c6 = arith.constant 6 : index
    %97 = memref.load %arg1[%c6] : memref<33xf32, #tpu.memory_space<smem>>
    %98 = vector.broadcast %97 : f32 to vector<8x128xf32>
    %99 = arith.mulf %98, %0 : vector<8x128xf32>
    %c14 = arith.constant 14 : index
    %100 = memref.load %arg1[%c14] : memref<33xf32, #tpu.memory_space<smem>>
    %101 = vector.broadcast %100 : f32 to vector<8x128xf32>
    %102 = arith.mulf %101, %1 : vector<8x128xf32>
    %103 = arith.addf %99, %102 : vector<8x128xf32>
    %c22 = arith.constant 22 : index
    %104 = memref.load %arg1[%c22] : memref<33xf32, #tpu.memory_space<smem>>
    %105 = vector.broadcast %104 : f32 to vector<8x128xf32>
    %106 = arith.addf %103, %105 : vector<8x128xf32>
    %c30 = arith.constant 30 : index
    %107 = memref.load %arg1[%c30] : memref<33xf32, #tpu.memory_space<smem>>
    %cst_9 = arith.constant 0.000000e+00 : f32
    %108 = vector.broadcast %cst_9 : f32 to vector<8x128xf32>
    %109 = arith.maximumf %106, %108 : vector<8x128xf32>
    %110 = vector.broadcast %107 : f32 to vector<8x128xf32>
    %111 = arith.mulf %110, %109 : vector<8x128xf32>
    %112 = arith.addf %96, %111 : vector<8x128xf32>
    %c7 = arith.constant 7 : index
    %113 = memref.load %arg1[%c7] : memref<33xf32, #tpu.memory_space<smem>>
    %114 = vector.broadcast %113 : f32 to vector<8x128xf32>
    %115 = arith.mulf %114, %0 : vector<8x128xf32>
    %c15 = arith.constant 15 : index
    %116 = memref.load %arg1[%c15] : memref<33xf32, #tpu.memory_space<smem>>
    %117 = vector.broadcast %116 : f32 to vector<8x128xf32>
    %118 = arith.mulf %117, %1 : vector<8x128xf32>
    %119 = arith.addf %115, %118 : vector<8x128xf32>
    %c23 = arith.constant 23 : index
    %120 = memref.load %arg1[%c23] : memref<33xf32, #tpu.memory_space<smem>>
    %121 = vector.broadcast %120 : f32 to vector<8x128xf32>
    %122 = arith.addf %119, %121 : vector<8x128xf32>
    %c31 = arith.constant 31 : index
    %123 = memref.load %arg1[%c31] : memref<33xf32, #tpu.memory_space<smem>>
    %cst_10 = arith.constant 0.000000e+00 : f32
    %124 = vector.broadcast %cst_10 : f32 to vector<8x128xf32>
    %125 = arith.maximumf %122, %124 : vector<8x128xf32>
    %126 = vector.broadcast %123 : f32 to vector<8x128xf32>
    %127 = arith.mulf %126, %125 : vector<8x128xf32>
    %128 = arith.addf %112, %127 : vector<8x128xf32>
    %c32 = arith.constant 32 : index
    %129 = memref.load %arg1[%c32] : memref<33xf32, #tpu.memory_space<smem>>
    %130 = vector.broadcast %129 : f32 to vector<8x128xf32>
    %131 = arith.addf %128, %130 : vector<8x128xf32>
    %c0_11 = arith.constant 0 : index
    %c0_12 = arith.constant 0 : index
    %132 = vector.load %arg4[%c0_11, %c0_12] : memref<8x128xf32, #tpu.memory_space<vmem>>, vector<8x128xf32>
    tpu.vector_store %arg4[%c0_11, %c0_12], %131 {strides = array<i32>} : memref<8x128xf32, #tpu.memory_space<vmem>>, vector<8x128xf32>,
    return
  }
  func.func @transform_0(%arg0: i32) -> i32 {
    %c0_i32 = arith.constant 0 : i32
    %c0_i32_0 = arith.constant 0 : i32
    return %c0_i32 : i32
  }
  func.func @transform_1(%arg0: i32) -> (i32, i32) {
    %c0_i32 = arith.constant 0 : i32
    %c0_i32_0 = arith.constant 0 : i32
    return %arg0, %c0_i32 : i32, i32
  }
  func.func @transform_2(%arg0: i32) -> (i32, i32) {
    %c0_i32 = arith.constant 0 : i32
    %c0_i32_0 = arith.constant 0 : i32
    return %arg0, %c0_i32 : i32, i32
  }
  func.func @transform_3(%arg0: i32) -> (i32, i32) {
    %c0_i32 = arith.constant 0 : i32
    %c0_i32_0 = arith.constant 0 : i32
    return %arg0, %c0_i32 : i32, i32
  }
}

</mosaic_0001>

<bundles_post_ra>
// kernel: lyapunov_net_forward.1
= control target key start
LH: loop header
LB: loop body
LE: loop exit
PB: predicated region body
PF: predicated region fallthrough
CT: control target
= control target key end

     0   :  { %8 = vsyncpa [#allocation3], 0  ;;  %s293_s0 = inlined_call_operand.vmem [shape: f32[33], index: 0, kind: input, shape index: {}]   ;;  %s294_s1 = inlined_call_operand.vmem [shape: f32[8,128], index: 1, kind: input, shape index: {}]   ;;  %s295_s2 = inlined_call_operand.vmem [shape: f32[8,128], index: 2, kind: input, shape index: {}]   ;;  %s296_s3 = inlined_call_operand.vmem [shape: f32[8,128], index: 3, kind: output, shape index: {}]  }
   0x1   :  { %s15_s14 = sshll.u32 %s293_s0, 4  ;;  %s16_s14 = int_to_ptr.vmem [resolvable:$true] %s15_s14 }
   0x2   :  { %s190_s15 = scalar_lea.vmem %s16_s14, 16  ;;  %p195_p1 = scmp.lt.s32.totalorder %s16_s14, %s16_s14 }
   0x3   :  { %p191_p0 = scmp.ne.s32.totalorder %s16_s14, %s190_s15  ;;  %p196_p2 = scmp.lt.s32.totalorder %s190_s15, %s190_s15 }
   0x5   :  { %p197_p3 = por %p196_p2, %p195_p1 }
   0x7   :  { %p198_p4 = pnand %p197_p3, %p191_p0 }
   0x9   :  { %201 = shalt.err (!%p198_p4)
}
   0xa   :  { %s204_s16 = smov [#allocation2]  }
   0xb   :  { %18 = dma.vmem_to_smem %s16_s14, 16, %s204_s16, [#allocation3]  }
   0xc   :  { %202 = dma.done.wait [#allocation3], 16  }
   0xd   :  { %203 = vsyncadd [#allocation3], 4294967280 }
   0xe   :  { %26 = sfence }
   0xf   :  { %s29_s17 = sld [smem:[#allocation2]]  ;;  %v233_v0 = vld [vmem:[%s294_s1] sm:$0xff] }
  0x10   :  { %s157_s18 = sld [smem:[#allocation2 + $0x8]]  ;;  %v238_v1 = vld [vmem:[%s295_s2] sm:$0xff] }
  0x11   :  { %s158_s19 = sld [smem:[#allocation2 + $0x10]] }
  0x12   :  { %s228_s20 = sld [smem:[#allocation2 + $0x18]] }
  0x13   :  { %s160_s22 = sld [smem:[#allocation2 + $0x1]] }
  0x14   :  { %s161_s25 = sld [smem:[#allocation2 + $0x9]] }
  0x15   :  { %v30_v2 = vstv %s29_s17  ;;  %s162_s26 = sld [smem:[#allocation2 + $0x11]] }
  0x16   :  { %v31_v3 = vmul.f32 %v30_v2, %v233_v0  ;;  %v33_v4 = vstv %s157_s18  ;;  %s241_s27 = sld [smem:[#allocation2 + $0x19]] }
  0x17   :  { %v34_v5 = vmul.f32 %v33_v4, %v238_v1  ;;  %s164_s28 = sld [smem:[#allocation2 + $0x2]]  ;;  %v37_v6 = vstv %s158_s19 }
  0x18   :  { %s165_s1 = sld [smem:[#allocation2 + $0xa]]  ;;  %v41_v17 = vstv %s228_s20 }
  0x19   :  { %v35_v7 = vadd.f32 %v34_v5, %v31_v3  ;;  %v44_v8 = vstv %s160_s22  ;;  %s244_s29 = sld [smem:[#allocation2 + $0x12]] }
  0x1a   :  { %v45_v9 = vmul.f32 %v44_v8, %v233_v0  ;;  %v47_v10 = vstv %s161_s25  ;;  %s247_s2 = sld [smem:[#allocation2 + $0x1a]] }
  0x1b   :  { %v38_v11 = vadd.f32 %v37_v6, %v35_v7  ;;  %v48_v12 = vmul.f32 %v47_v10, %v238_v1  ;;  %s168_s30 = sld [smem:[#allocation2 + $0x3]]  ;;  %v51_v13 = vstv %s162_s26 }
  0x1c   :  { %s169_s4 = sld [smem:[#allocation2 + $0xb]]  ;;  %v55_v22 = vstv %s241_s27 }
  0x1d   :  { %v40_v14 = vmax.f32 %v38_v11, 0.0  ;;  %v49_v15 = vadd.f32 %v48_v12, %v45_v9  ;;  %v59_v16 = vstv %s164_s28  ;;  %s250_s5 = sld [smem:[#allocation2 + $0x13]] }
  0x1e   :  { %v60_v18 = vmul.f32 %v59_v16, %v233_v0  ;;  %v62_v19 = vstv %s165_s1  ;;  %s254_s6 = sld [smem:[#allocation2 + $0x1b]] }
  0x1f   :  { %v52_v20 = vadd.f32 %v51_v13, %v49_v15  ;;  %v63_v21 = vmul.f32 %v62_v19, %v238_v1  ;;  %s172_s7 = sld [smem:[#allocation2 + $0x4]]  ;;  %v66_v23 = vstv %s244_s29  ;;  %v42_v24 = vmul.f32 %v41_v17, %v40_v14 }
  0x20   :  { %s173_s8 = sld [smem:[#allocation2 + $0xc]]  ;;  %v70_v33 = vstv %s247_s2 }
  0x21   :  { %v54_v25 = vmax.f32 %v52_v20, 0.0  ;;  %v64_v26 = vadd.f32 %v63_v21, %v60_v18  ;;  %v74_v27 = vstv %s168_s30  ;;  %s259_s9 = sld [smem:[#allocation2 + $0x14]] }
  0x22   :  { %v75_v28 = vmul.f32 %v74_v27, %v233_v0  ;;  %v77_v29 = vstv %s169_s4  ;;  %s262_s10 = sld [smem:[#allocation2 + $0x1c]] }
  0x23   :  { %v56_v30 = vmul.f32 %v55_v22, %v54_v25  ;;  %v67_v31 = vadd.f32 %v66_v23, %v64_v26  ;;  %v78_v32 = vmul.f32 %v77_v29, %v238_v1  ;;  %s176_s11 = sld [smem:[#allocation2 + $0x5]]  ;;  %v81_v34 = vstv %s250_s5 }
  0x24   :  { %s177_s12 = sld [smem:[#allocation2 + $0xd]]  ;;  %v85_v44 = vstv %s254_s6 }
  0x25   :  { %v57_v35 = vadd.f32 %v56_v30, %v42_v24  ;;  %v69_v36 = vmax.f32 %v67_v31, 0.0  ;;  %v79_v37 = vadd.f32 %v78_v32, %v75_v28  ;;  %v89_v38 = vstv %s172_s7  ;;  %s267_s13 = sld [smem:[#allocation2 + $0x15]] }
  0x26   :  { %v90_v39 = vmul.f32 %v89_v38, %v233_v0  ;;  %v92_v40 = vstv %s173_s8  ;;  %s270_s14 = sld [smem:[#allocation2 + $0x1d]] }
  0x27   :  { %v71_v41 = vmul.f32 %v70_v33, %v69_v36  ;;  %v82_v42 = vadd.f32 %v81_v34, %v79_v37  ;;  %v93_v43 = vmul.f32 %v92_v40, %v238_v1  ;;  %s180_s15 = sld [smem:[#allocation2 + $0x6]]  ;;  %v96_v45 = vstv %s259_s9 }
  0x28   :  { %s181_s16 = sld [smem:[#allocation2 + $0xe]]  ;;  %v100_v55 = vstv %s262_s10 }
  0x29   :  { %v72_v46 = vadd.f32 %v71_v41, %v57_v35  ;;  %v84_v47 = vmax.f32 %v82_v42, 0.0  ;;  %v94_v48 = vadd.f32 %v93_v43, %v90_v39  ;;  %v104_v49 = vstv %s176_s11  ;;  %s275_s17 = sld [smem:[#allocation2 + $0x16]] }
  0x2a   :  { %v105_v50 = vmul.f32 %v104_v49, %v233_v0  ;;  %v107_v51 = vstv %s177_s12  ;;  %s278_s18 = sld [smem:[#allocation2 + $0x1e]] }
  0x2b   :  { %v86_v52 = vmul.f32 %v85_v44, %v84_v47  ;;  %v97_v53 = vadd.f32 %v96_v45, %v94_v48  ;;  %v108_v54 = vmul.f32 %v107_v51, %v238_v1  ;;  %s184_s19 = sld [smem:[#allocation2 + $0x7]]  ;;  %v111_v56 = vstv %s267_s13 }
  0x2c   :  { %s185_s20 = sld [smem:[#allocation2 + $0xf]]  ;;  %v115_v4 = vstv %s270_s14 }
  0x2d   :  { %v87_v57 = vadd.f32 %v86_v52, %v72_v46  ;;  %v99_v58 = vmax.f32 %v97_v53, 0.0  ;;  %v109_v59 = vadd.f32 %v108_v54, %v105_v50  ;;  %v119_v60 = vstv %s180_s15  ;;  %s186_s21 = sld [smem:[#allocation2 + $0x17]] }
  0x2e   :  { %v120_v61 = vmul.f32 %v119_v60, %v233_v0  ;;  %v122_v62 = vstv %s181_s16  ;;  %s187_s0 = sld [smem:[#allocation2 + $0x1f]] }
  0x2f   :  { %v101_v63 = vmul.f32 %v100_v55, %v99_v58  ;;  %v112_v2 = vadd.f32 %v111_v56, %v109_v59  ;;  %v123_v3 = vmul.f32 %v122_v62, %v238_v1  ;;  %v126_v5 = vstv %s275_s17  ;;  %s188_s22 = sld [smem:[#allocation2 + $0x20]] }
  0x30   :  { %v130_v15 = vstv %s278_s18 }
  0x31   :  { %v102_v6 = vadd.f32 %v101_v63, %v87_v57  ;;  %v114_v7 = vmax.f32 %v112_v2, 0.0  ;;  %v124_v8 = vadd.f32 %v123_v3, %v120_v61  ;;  %v134_v9 = vstv %s184_s19 }
  0x32   :  { %v135_v10 = vmul.f32 %v134_v9, %v233_v0  ;;  %v137_v11 = vstv %s185_s20 }
  0x33   :  { %v116_v12 = vmul.f32 %v115_v4, %v114_v7  ;;  %v127_v13 = vadd.f32 %v126_v5, %v124_v8  ;;  %v138_v14 = vmul.f32 %v137_v11, %v238_v1  ;;  %v141_v16 = vstv %s186_s21 }
  0x34   :  { %v145_v22 = vstv %s187_s0 }
  0x35   :  { %v117_v17 = vadd.f32 %v116_v12, %v102_v6  ;;  %v129_v18 = vmax.f32 %v127_v13, 0.0  ;;  %v139_v19 = vadd.f32 %v138_v14, %v135_v10  ;;  %v149_v26 = vstv %s188_s22 }
  0x37   :  { %v131_v20 = vmul.f32 %v130_v15, %v129_v18  ;;  %v142_v21 = vadd.f32 %v141_v16, %v139_v19 }
  0x39   :  { %v132_v23 = vadd.f32 %v131_v20, %v117_v17  ;;  %v144_v24 = vmax.f32 %v142_v21, 0.0 }
  0x3b   :  { %v146_v25 = vmul.f32 %v145_v22, %v144_v24 }
  0x3d   :  { %v147_v27 = vadd.f32 %v146_v25, %v132_v23 }
  0x3f   :  { %v150_v0 = vadd.f32 %v149_v26, %v147_v27 }
  0x41   :  { %151 = vst [vmem:[%s296_s3] sm:$0xff] %v150_v0 }
  0x42   :  { %156 = vsyncpa [#allocation3], 1 }

</bundles_post_ra>
